<compile_context>
chip_gen: v5e
topology: v5e:2x2
jax: 0.10.0
libtpu: 0.0.40
codegen_flags: <defaults>
</compile_context>

<pallas_src>
import jax
import jax.numpy as jnp
from jax.experimental import pallas as pl
from jax.experimental.pallas import tpu as pltpu


# ---------------------------------------------------------------------------
# Kernels
# ---------------------------------------------------------------------------

def _rowwise_kernel(cand_ref, user_ref, out_ref):
    """Generic path: (TB, D) blocks -> per-row dot -> (1, TB) lane-dense row."""
    c = cand_ref[...].astype(jnp.float32)
    u = user_ref[...].astype(jnp.float32)
    s = jnp.sum(c * u, axis=1)                              # (TB,) f32, lane reduce (XLU)
    # One sublane->lane relayout per tile; hidden under the much larger input DMA.
    out_ref[...] = s.reshape(1, -1).astype(out_ref.dtype)   # (1, TB) lane-dense


def _folded_kernel(cand_ref, user_ref, ones_ref, out_ref):
    """Small-D path: inputs pre-folded to (R, 128) with G = 128 // D rows per 128 lanes.

    ones_ref is (128, G) with ones[l, g] = (l // D == g); one MXU matmul does
    the per-group lane reduce and leaves the result already in the natural
    (TR, G) output layout (no sublane<->lane relayout).
    """
    prod = cand_ref[...].astype(jnp.float32) * user_ref[...].astype(jnp.float32)
    out_ref[...] = jnp.dot(
        prod, ones_ref[...],
        preferred_element_type=jnp.float32,
        precision=jax.lax.Precision.HIGHEST,
    ).astype(out_ref.dtype)


# ---------------------------------------------------------------------------
# Wrapper
# ---------------------------------------------------------------------------

_TARGET_BLOCK_BYTES = 4 << 20   # VMEM per input block (lane-padded accounting)
_VMEM_LIMIT_BYTES = 48 << 20    # 2 inputs x 2 buffers x 4 MiB = 16 MiB << limit


def _round_up(x, m):
    return (x + m - 1) // m * m


def _choose_tile_rows(rows, padded_row_bytes, granule):
    """Rows per grid step: ~_TARGET_BLOCK_BYTES of VMEM per input block, a
    multiple of `granule`, and (when the batch allows) small enough to leave
    >= 2 grid steps so the 'parallel' axis shards across both v7x cores."""
    tr = (_TARGET_BLOCK_BYTES // max(1, padded_row_bytes)) // granule * granule
    tr = max(granule, tr)
    if rows > granule:
        tr = min(tr, max(granule, ((rows - 1) // granule) * granule))
    tr = min(tr, _round_up(rows, granule))
    return tr


@jax.jit
def dot_product_click_predictor(candidate_news_vector, user_vector):
    """Batched dot product: (B, D), (B, D) -> (B,)."""
    assert candidate_news_vector.shape == user_vector.shape
    assert candidate_news_vector.ndim == 2
    B, D = candidate_news_vector.shape
    dtype = candidate_news_vector.dtype
    itemsize = jnp.dtype(dtype).itemsize

    cost = pl.CostEstimate(
        flops=2 * B * D,
        transcendentals=0,
        bytes_accessed=2 * B * D * itemsize + B * itemsize,
    )
    compiler_params = pltpu.CompilerParams(
        dimension_semantics=("parallel",),
        vmem_limit_bytes=_VMEM_LIMIT_BYTES,
    )

    # --- Small-D lane-folding path (production shape D=32) -----------------
    if D < 128 and 128 % D == 0 and (B * D) % 128 == 0:
        G = 128 // D
        R = (B * D) // 128
        cand = candidate_news_vector.reshape(R, 128)   # free: rows contiguous in HBM
        user = user_vector.reshape(R, 128)

        lane_grp = jax.lax.broadcasted_iota(jnp.int32, (128, G), 0) // D
        col = jax.lax.broadcasted_iota(jnp.int32, (128, G), 1)
        ones_bd = (lane_grp == col).astype(jnp.float32)          # (128, G)

        TR = _choose_tile_rows(R, 128 * itemsize, granule=8)
        grid = (pl.cdiv(R, TR),)

        out = pl.pallas_call(
            _folded_kernel,
            out_shape=jax.ShapeDtypeStruct((R, G), dtype),
            grid_spec=pltpu.PrefetchScalarGridSpec(
                num_scalar_prefetch=0,
                grid=grid,
                in_specs=[
                    pl.BlockSpec((TR, 128), lambda i: (i, 0)),
                    pl.BlockSpec((TR, 128), lambda i: (i, 0)),
                    pl.BlockSpec((128, G), lambda i: (0, 0)),
                ],
                out_specs=pl.BlockSpec((TR, G), lambda i: (i, 0)),
            ),
            compiler_params=compiler_params,
            cost_estimate=cost,
        )(cand, user, ones_bd)
        # (R, G) row-major flattens to batch order r*G + g == b.
        return out.reshape(-1)

    # --- Generic per-row path (no wrapper padding, ragged last block) ------
    padded_row_bytes = _round_up(max(D, 1), 128) * itemsize   # (8,128)-tiled VMEM cost
    TB = _choose_tile_rows(B, padded_row_bytes, granule=128)
    grid = (pl.cdiv(B, TB),)

    out_row = pl.pallas_call(
        _rowwise_kernel,
        out_shape=jax.ShapeDtypeStruct((1, B), dtype),
        grid_spec=pltpu.PrefetchScalarGridSpec(
            num_scalar_prefetch=0,
            grid=grid,
            in_specs=[
                pl.BlockSpec((TB, D), lambda i: (i, 0)),
                pl.BlockSpec((TB, D), lambda i: (i, 0)),
            ],
            out_specs=pl.BlockSpec((1, TB), lambda i: (0, i)),
        ),
        compiler_params=compiler_params,
        cost_estimate=cost,
    )(candidate_news_vector, user_vector)

    return out_row.reshape(-1)


# ---------------------------------------------------------------------------
# Self-test
# ---------------------------------------------------------------------------

if __name__ == "__main__":
    key = jax.random.PRNGKey(0)
    k1, k2 = jax.random.split(key)

    # 1) Small module-consistent shape: (batch=2, hidden=32). B*D % 128 != 0,
    #    so this exercises the generic path with a single oversized/ragged block.
    B, D = 2, 32
    candidate_news_vector = jax.random.normal(k1, (B, D), dtype=jnp.float32)
    user_vector = jax.random.normal(k2, (B, D), dtype=jnp.float32)
    prob = jax.block_until_ready(
        dot_product_click_predictor(candidate_news_vector, user_vector))
    ref = jnp.sum(candidate_news_vector * user_vector, axis=-1)
    assert prob.shape == (B,)
    assert jnp.allclose(prob, ref, atol=1e-5, rtol=1e-5), (prob, ref)

    # 2) Generic path, multi-tile + ragged last block (B % 128 != 0, no padding).
    k3, k4 = jax.random.split(k2)
    B2, D2 = 2050, 512          # TB=2048 -> grid=2, second block has 2 valid rows
    cand2 = jax.random.normal(k3, (B2, D2), dtype=jnp.float32)
    user2 = jax.random.normal(k4, (B2, D2), dtype=jnp.float32)
    prob2 = jax.block_until_ready(dot_product_click_predictor(cand2, user2))
    ref2 = jnp.sum(cand2 * user2, axis=-1)
    assert prob2.shape == (B2,)
    assert jnp.allclose(prob2, ref2, atol=1e-3, rtol=1e-4)

    # 3) Lane-folded small-D path (production D=32): B*D % 128 == 0,
    #    R=128, G=4, TR=120 -> grid=2 with a ragged folded last block.
    k5, k6 = jax.random.split(k4)
    B3, D3 = 512, 32
    cand3 = jax.random.normal(k5, (B3, D3), dtype=jnp.float32)
    user3 = jax.random.normal(k6, (B3, D3), dtype=jnp.float32)
    prob3 = jax.block_until_ready(dot_product_click_predictor(cand3, user3))
    ref3 = jnp.sum(cand3 * user3, axis=-1)
    assert prob3.shape == (B3,)
    assert jnp.allclose(prob3, ref3, atol=1e-4, rtol=1e-5)

    print("KERNEL_OK")
</pallas_src>

<mosaic_0001>
module attributes {stable_mosaic.version = 11 : i64} {
  func.func @_rowwise_kernel(%arg0: i32, %arg1: memref<128x32xf32, #tpu.memory_space<vmem>>, %arg2: memref<128x32xf32, #tpu.memory_space<vmem>>, %arg3: memref<1x128xf32, #tpu.memory_space<vmem>>) attributes {dimension_semantics = [#tpu.dimension_semantics<parallel>], iteration_bounds = array<i64: 1>, scalar_prefetch = 0 : i64, scratch_operands = 0 : i64, tpu.core_type = #tpu.core_type<tc>, window_params = [{transform_indices = @transform_0, window_bounds = array<i64: 128, 32>}, {transform_indices = @transform_1, window_bounds = array<i64: 128, 32>}, {transform_indices = @transform_2, window_bounds = array<i64: 1, 128>}]} {
    %c0 = arith.constant 0 : index
    %c0_0 = arith.constant 0 : index
    %0 = vector.load %arg1[%c0, %c0_0] : memref<128x32xf32, #tpu.memory_space<vmem>>, vector<128x32xf32>
    %c0_1 = arith.constant 0 : index
    %c0_2 = arith.constant 0 : index
    %1 = vector.load %arg2[%c0_1, %c0_2] : memref<128x32xf32, #tpu.memory_space<vmem>>, vector<128x32xf32>
    %2 = arith.mulf %0, %1 : vector<128x32xf32>
    %cst = arith.constant dense<0.000000e+00> : vector<128xf32>
    %3 = vector.multi_reduction <add>, %2, %cst [1] : vector<128x32xf32> to vector<128xf32>
    %4 = vector.shape_cast %3 : vector<128xf32> to vector<1x128xf32>
    %c0_3 = arith.constant 0 : index
    %c0_4 = arith.constant 0 : index
    %5 = vector.load %arg3[%c0_3, %c0_4] : memref<1x128xf32, #tpu.memory_space<vmem>>, vector<1x128xf32>
    tpu.vector_store %arg3[%c0_3, %c0_4], %4 {strides = array<i32>} : memref<1x128xf32, #tpu.memory_space<vmem>>, vector<1x128xf32>,
    return
  }
  func.func @transform_0(%arg0: i32) -> (i32, i32) {
    %c0_i32 = arith.constant 0 : i32
    %c0_i32_0 = arith.constant 0 : i32
    return %arg0, %c0_i32 : i32, i32
  }
  func.func @transform_1(%arg0: i32) -> (i32, i32) {
    %c0_i32 = arith.constant 0 : i32
    %c0_i32_0 = arith.constant 0 : i32
    return %arg0, %c0_i32 : i32, i32
  }
  func.func @transform_2(%arg0: i32) -> (i32, i32) {
    %c0_i32 = arith.constant 0 : i32
    %c0_i32_0 = arith.constant 0 : i32
    return %c0_i32, %arg0 : i32, i32
  }
}

</mosaic_0001>

<bundles_post_ra>
// kernel: dot_product_click_predictor.1
= control target key start
LH: loop header
LB: loop body
LE: loop exit
PB: predicated region body
PF: predicated region fallthrough
CT: control target
= control target key end

     0   :  { %7 = vsyncpa [#allocation3], 0  ;;  %s386_s0 = inlined_call_operand.hbm [shape: f32[2,32], index: 0, kind: input, shape index: {}]   ;;  %s387_s1 = inlined_call_operand.hbm [shape: f32[2,32], index: 1, kind: input, shape index: {}]   ;;  %s388_s2 = inlined_call_operand.hbm [shape: f32[1,2], index: 2, kind: output, shape index: {}]  }
   0x1   :  { %8 = vsyncpa [#allocation6], 0 }
   0x2   :  { %9 = vsyncpa [#allocation4], 0 }
   0x3   :  { %13 = vsyncadd [#allocation3], 2016  ;;  %s14_s11 = sshll.u32 %s386_s0, 4  ;;  %s323_s12 = smov [#allocation2]   ;;  %s15_s11 = int_to_ptr.hbm [resolvable:$true] %s14_s11 }
   0x4   :  { %s16_s13 = sshll.u32 %s323_s12, 4  ;;  %s324_s14 = smov 32   ;;  %s17_s13 = int_to_ptr.vmem [resolvable:$true] %s16_s13 }
   0x5   :  { %s325_s15 = smov 2  }
   0x6   :  { %22 = dma.hbm_to_vmem [thread:$0]  %s15_s11, 32, %s17_s13, [#allocation3], %s324_s14, %s324_s14, %s325_s15  }
   0x7   :  { %26 = vsyncadd [#allocation6], 2016  ;;  %s27_s18 = sshll.u32 %s387_s1, 4  ;;  %s326_s19 = smov [#allocation5]   ;;  %s28_s18 = int_to_ptr.hbm [resolvable:$true] %s27_s18 }
   0x8   :  { %s29_s20 = sshll.u32 %s326_s19, 4  ;;  %s30_s20 = int_to_ptr.vmem [resolvable:$true] %s29_s20 }
   0x9   :  { %35 = dma.hbm_to_vmem [thread:$0]  %s28_s18, 32, %s30_s20, [#allocation6], %s324_s14, %s324_s14, %s325_s15  }
   0xa   :  { %317 = dma.done.wait [#allocation3], 2048  }
   0xb   :  { %318 = vsyncadd [#allocation3], 4294965248 }
   0xc   :  { %319 = dma.done.wait [#allocation6], 2048  }
   0xd   :  { %320 = vsyncadd [#allocation6], 4294965248  ;;  %v44_v0 = vld [vmem:[#allocation2] sm:$0xff]  ;;  %vm92_vm0 = vcmask 261120   ;;  %v46_v2 = vld [vmem:[#allocation2 + $0x10] sm:$0xff]  ;;  %vm162_vm1 = vcmask 130112  }
   0xe   :  { %v60_v1 = vld [vmem:[#allocation5] sm:$0xff]  ;;  %v62_v4 = vld [vmem:[#allocation5 + $0x10] sm:$0xff]  ;;  %v45_v9 = vld [vmem:[#allocation2 + $0x8] sm:$0xff]  ;;  %vm166_vm2 = vcmask 195712   ;;  %vm170_vm3 = vcmask 261312   ;;  %vm174_vm4 = vcmask 326912  }
   0xf   :  { %v76_v3 = vmul.f32 %v60_v1, %v44_v0  ;;  %v48_v5 = vld [vmem:[#allocation2 + $0x20] sm:$0xff]  ;;  %v78_v7 = vmul.f32 %v62_v4, %v46_v2  ;;  %v61_v10 = vld [vmem:[#allocation5 + $0x8] sm:$0xff]  ;;  %v47_v11 = vld [vmem:[#allocation2 + $0x18] sm:$0xff]  ;;  %v157_v0 = vlaneseq  ;;  %vm178_vm5 = vcmask 392512   ;;  %s327_s0 = smov [#allocation7]   ;;  %s229_s23 = sshll.u32 %s388_s2, 4  ;;  %s230_s23 = int_to_ptr.hbm [resolvable:$true] %s229_s23 }
  0x10   :  { %v64_v6 = vld [vmem:[#allocation5 + $0x20] sm:$0xff]  ;;  %v63_v13 = vld [vmem:[#allocation5 + $0x18] sm:$0xff]  ;;  %v49_v14 = vld [vmem:[#allocation2 + $0x28] sm:$0xff]  ;;  %v77_v18 = vmul.f32 %v61_v10, %v45_v9  ;;  %vm182_vm6 = vcmask 458112   ;;  %vm186_vm7 = vcmask 523712   ;;  %vm190_vm8 = vcmask 589312  }
  0x11   :  { %v80_v8 = vmul.f32 %v64_v6, %v48_v5  ;;  %v93_v12 = vsel %vm92_vm0, %v76_v3, 0.0  ;;  %v65_v15 = vld [vmem:[#allocation5 + $0x28] sm:$0xff]  ;;  %v99_v16 = vsel %vm92_vm0, %v78_v7, 0.0  ;;  %v79_v19 = vmul.f32 %v63_v13, %v47_v11  ;;  %v50_v24 = vld [vmem:[#allocation2 + $0x30] sm:$0xff]  ;;  %v51_v26 = vld [vmem:[#allocation2 + $0x38] sm:$0xff]  ;;  %s227_s1 = sshll.u32 %s327_s0, 4  ;;  %s228_s1 = int_to_ptr.vmem [resolvable:$true] %s227_s1 }
  0x12   :  { %94 = vadd.xlane.f32.xlu0 %v93_v12  ;;  %100 = vadd.xlane.f32.xlu1 %v99_v16  ;;  %v81_v20 = vmul.f32 %v65_v15, %v49_v14  ;;  %v96_v21 = vsel %vm92_vm0, %v77_v18, 0.0  ;;  %v66_v25 = vld [vmem:[#allocation5 + $0x30] sm:$0xff]  ;;  %v67_v27 = vld [vmem:[#allocation5 + $0x38] sm:$0xff]  ;;  %v52_v28 = vld [vmem:[#allocation2 + $0x40] sm:$0xff]  ;;  %v365_v4 = vand.u32 127, %v157_v0  ;;  %vm194_vm9 = vcmask 654912  }
  0x13   :  { %v105_v17 = vsel %vm92_vm0, %v80_v8, 0.0  ;;  %v102_v22 = vsel %vm92_vm0, %v79_v19, 0.0  ;;  %v68_v29 = vld [vmem:[#allocation5 + $0x40] sm:$0xff]  ;;  %v82_v30 = vmul.f32 %v66_v25, %v50_v24  ;;  %v83_v31 = vmul.f32 %v67_v27, %v51_v26  ;;  %v53_v36 = vld [vmem:[#allocation2 + $0x48] sm:$0xff]  ;;  %v54_v38 = vld [vmem:[#allocation2 + $0x50] sm:$0xff] }
  0x14   :  { %106 = vadd.xlane.f32.xlu2 %v105_v17  ;;  %v108_v23 = vsel %vm92_vm0, %v81_v20, 0.0  ;;  %v84_v32 = vmul.f32 %v68_v29, %v52_v28  ;;  %v69_v37 = vld [vmem:[#allocation5 + $0x48] sm:$0xff]  ;;  %v70_v39 = vld [vmem:[#allocation5 + $0x50] sm:$0xff]  ;;  %v55_v40 = vld [vmem:[#allocation2 + $0x58] sm:$0xff]  ;;  %v160_v5 = vadd.s32 4294967288, %v365_v4  ;;  %v164_v6 = vadd.s32 4294967280, %v365_v4 }
  0x15   :  { %v111_v33 = vsel %vm92_vm0, %v82_v30, 0.0  ;;  %v114_v34 = vsel %vm92_vm0, %v83_v31, 0.0  ;;  %v71_v41 = vld [vmem:[#allocation5 + $0x58] sm:$0xff]  ;;  %v85_v42 = vmul.f32 %v69_v37, %v53_v36  ;;  %v86_v43 = vmul.f32 %v70_v39, %v54_v38  ;;  %v56_v48 = vld [vmem:[#allocation2 + $0x60] sm:$0xff]  ;;  %v57_v50 = vld [vmem:[#allocation2 + $0x68] sm:$0xff] }
  0x16   :  { %v117_v35 = vsel %vm92_vm0, %v84_v32, 0.0  ;;  %v87_v44 = vmul.f32 %v71_v41, %v55_v40  ;;  %v72_v49 = vld [vmem:[#allocation5 + $0x60] sm:$0xff]  ;;  %v73_v51 = vld [vmem:[#allocation5 + $0x68] sm:$0xff]  ;;  %v58_v52 = vld [vmem:[#allocation2 + $0x70] sm:$0xff]  ;;  %v168_v7 = vadd.s32 4294967272, %v365_v4  ;;  %v172_v16 = vadd.s32 4294967264, %v365_v4 }
  0x17   :  { %v120_v45 = vsel %vm92_vm0, %v85_v42, 0.0  ;;  %v123_v46 = vsel %vm92_vm0, %v86_v43, 0.0  ;;  %v74_v53 = vld [vmem:[#allocation5 + $0x70] sm:$0xff]  ;;  %v88_v54 = vmul.f32 %v72_v49, %v56_v48  ;;  %v89_v55 = vmul.f32 %v73_v51, %v57_v50  ;;  %v59_v60 = vld [vmem:[#allocation2 + $0x78] sm:$0xff] }
  0x18   :  { %v126_v47 = vsel %vm92_vm0, %v87_v44, 0.0  ;;  %v90_v56 = vmul.f32 %v74_v53, %v58_v52  ;;  %v75_v61 = vld [vmem:[#allocation5 + $0x78] sm:$0xff]  ;;  %v176_v18 = vadd.s32 4294967256, %v365_v4  ;;  %v180_v19 = vadd.s32 4294967248, %v365_v4 }
  0x19   :  { %v129_v57 = vsel %vm92_vm0, %v88_v54, 0.0  ;;  %v132_v58 = vsel %vm92_vm0, %v89_v55, 0.0  ;;  %v91_v62 = vmul.f32 %v75_v61, %v59_v60  ;;  %v184_v24 = vadd.s32 4294967240, %v365_v4 }
  0x1a   :  { %97 = vadd.xlane.f32.xlu0 %v96_v21  ;;  %103 = vadd.xlane.f32.xlu1 %v102_v22  ;;  %v135_v59 = vsel %vm92_vm0, %v90_v56, 0.0  ;;  %v188_v29 = vadd.s32 4294967232, %v365_v4  ;;  %v192_v32 = vadd.s32 4294967224, %v365_v4  ;;  %v196_v36 = vadd.s32 4294967216, %v365_v4 }
  0x1b   :  { %v138_v63 = vsel %vm92_vm0, %v91_v62, 0.0  ;;  %v200_v41 = vadd.s32 4294967208, %v365_v4  ;;  %vm198_vm10 = vcmask 720512   ;;  %vm202_vm11 = vcmask 786112  }
  0x1c   :  { %109 = vadd.xlane.f32.xlu2 %v108_v23  ;;  %vm206_vm12 = vcmask 851712   ;;  %v212_v52 = vadd.s32 4294967184, %v365_v4  ;;  %vm210_vm13 = vcmask 917312   ;;  %vm214_vm14 = vcmask 982912  }
  0x1d   :  { %vm218_vm15 = vcmask 1048512  }
  0x22   :  { %112 = vadd.xlane.f32.xlu0 %v111_v33  ;;  %115 = vadd.xlane.f32.xlu1 %v114_v34 }
  0x24   :  { %118 = vadd.xlane.f32.xlu2 %v117_v35 }
  0x2a   :  { %121 = vadd.xlane.f32.xlu0 %v120_v45  ;;  %124 = vadd.xlane.f32.xlu1 %v123_v46  ;;  %v204_v45 = vadd.s32 4294967200, %v365_v4 }
  0x2c   :  { %127 = vadd.xlane.f32.xlu2 %v126_v47  ;;  %v208_v47 = vadd.s32 4294967192, %v365_v4 }
  0x32   :  { %130 = vadd.xlane.f32.xlu0 %v129_v57  ;;  %133 = vadd.xlane.f32.xlu1 %v132_v58  ;;  %v216_v57 = vadd.s32 4294967176, %v365_v4 }
  0x34   :  { %136 = vadd.xlane.f32.xlu2 %v135_v59 }
  0x3a   :  { %139 = vadd.xlane.f32.xlu0 %v138_v63 }
  0x85   :  { %v95_v1 = vpop.xlane.xlu0 %94  ;;  %v101_v2 = vpop.xlane.xlu1 %100 }
  0x86   :  { %v159_v9 = vperm.slane %v95_v1, %v365_v4  ;;  %v165_v13 = vperm.slane %v101_v2, %v164_v6 }
  0x87   :  { %v107_v3 = vpop.xlane.xlu2 %106 }
  0x88   :  { %v173_v21 = vperm.slane %v107_v3, %v172_v16 }
  0x8d   :  { %v98_v8 = vpop.xlane.xlu0 %97  ;;  %v104_v11 = vpop.xlane.xlu1 %103 }
  0x8e   :  { %v161_v10 = vperm.slane %v98_v8, %v160_v5  ;;  %v169_v15 = vperm.slane %v104_v11, %v168_v7 }
  0x8f   :  { %v110_v12 = vpop.xlane.xlu2 %109 }
  0x90   :  { %v163_v14 = vsel %vm162_vm1, %v161_v10, %v159_v9  ;;  %v177_v23 = vperm.slane %v110_v12, %v176_v18 }
  0x91   :  { %v167_v17 = vsel %vm166_vm2, %v165_v13, %v163_v14 }
  0x92   :  { %v171_v20 = vsel %vm170_vm3, %v169_v15, %v167_v17 }
  0x93   :  { %v175_v27 = vsel %vm174_vm4, %v173_v21, %v171_v20 }
  0x94   :  { %v179_v30 = vsel %vm178_vm5, %v177_v23, %v175_v27 }
  0x95   :  { %v113_v22 = vpop.xlane.xlu0 %112  ;;  %v116_v25 = vpop.xlane.xlu1 %115 }
  0x96   :  { %v181_v28 = vperm.slane %v113_v22, %v180_v19  ;;  %v185_v31 = vperm.slane %v116_v25, %v184_v24 }
  0x97   :  { %v119_v26 = vpop.xlane.xlu2 %118 }
  0x98   :  { %v183_v33 = vsel %vm182_vm6, %v181_v28, %v179_v30  ;;  %v189_v34 = vperm.slane %v119_v26, %v188_v29 }
  0x99   :  { %v187_v37 = vsel %vm186_vm7, %v185_v31, %v183_v33 }
  0x9a   :  { %v191_v42 = vsel %vm190_vm8, %v189_v34, %v187_v37 }
  0x9d   :  { %v122_v35 = vpop.xlane.xlu0 %121  ;;  %v125_v39 = vpop.xlane.xlu1 %124 }
  0x9e   :  { %v193_v38 = vperm.slane %v122_v35, %v192_v32  ;;  %v197_v43 = vperm.slane %v125_v39, %v196_v36 }
  0x9f   :  { %v128_v40 = vpop.xlane.xlu2 %127 }
  0xa0   :  { %v195_v44 = vsel %vm194_vm9, %v193_v38, %v191_v42  ;;  %v201_v46 = vperm.slane %v128_v40, %v200_v41 }
  0xa1   :  { %v199_v48 = vsel %vm198_vm10, %v197_v43, %v195_v44 }
  0xa2   :  { %v203_v53 = vsel %vm202_vm11, %v201_v46, %v199_v48 }
  0xa5   :  { %v131_v49 = vpop.xlane.xlu0 %130  ;;  %v134_v51 = vpop.xlane.xlu1 %133 }
  0xa6   :  { %v205_v50 = vperm.slane %v131_v49, %v204_v45  ;;  %v209_v54 = vperm.slane %v134_v51, %v208_v47 }
  0xa7   :  { %v137_v55 = vpop.xlane.xlu2 %136 }
  0xa8   :  { %v207_v56 = vsel %vm206_vm12, %v205_v50, %v203_v53  ;;  %v213_v58 = vperm.slane %v137_v55, %v212_v52 }
  0xa9   :  { %v211_v59 = vsel %vm210_vm13, %v209_v54, %v207_v56 }
  0xaa   :  { %v215_v62 = vsel %vm214_vm14, %v213_v58, %v211_v59 }
  0xad   :  { %v140_v60 = vpop.xlane.xlu0 %139 }
  0xae   :  { %v217_v61 = vperm.slane %v140_v60, %v216_v57 }
  0xb0   :  { %v219_v63 = vsel %vm218_vm15, %v217_v61, %v215_v62 }
  0xb1   :  { %221 = vst [vmem:[#allocation7] sm:$0x1] %v219_v63 }
  0xb2   :  { %232 = dma.vmem_to_hbm [thread:$0]  %s228_s1, 16, %s230_s23, [#allocation4]  }
  0xb3   :  { %321 = dma.done.wait [#allocation4], 16  }
  0xb4   :  { %322 = vsyncadd [#allocation4], 4294967280 }
  0xb5   :  { %237 = vsyncpa [#allocation3], 1 }
  0xb6   :  { %238 = vsyncpa [#allocation6], 1 }
  0xb7   :  { %239 = vsyncpa [#allocation4], 1 }

</bundles_post_ra>
